<compile_context>
chip_gen: v5e
topology: v5e:2x2
jax: 0.10.0
libtpu: 0.0.40
codegen_flags: <defaults>
</compile_context>

<pallas_src>
import functools

import jax
import jax.numpy as jnp
from jax.experimental import pallas as pl
from jax.experimental.pallas import tpu as pltpu


def _conv_kernel(x_ref, w_ref, b_ref, o_ref, *, KH, KW, s, Wq, Lv):
    """One (image, row-tile) grid step.

    x_ref: (1, 1, s*s, Cin, Lt)  lane-flattened, phase-decomposed input band
    w_ref: (Cout, KH*KW*Cin)     resident weight matrix, K ordered (kh, kw, ci)
    b_ref: (Cout, 1)             resident bias column (f32)
    o_ref: (1, 1, Cout, Lv)      out^T = W @ X^T; M (flattened rows) on lanes
    """
    nph = s * s
    # Load each stride-phase once; every tap below is a static lane-offset
    # slice of these VMEM-resident values (unit stride, no dilation).
    phase = [x_ref[0, 0, p] for p in range(nph)]            # each (Cin, Lt)

    rows = []
    for kh in range(KH):                                     # static unroll
        for kw in range(KW):
            p = (kh % s) * s + (kw % s)                      # stride phase
            off = (kh // s) * Wq + (kw // s)                 # static lane shift
            rows.append(phase[p][:, off:off + Lv])           # (Cin, Lv)

    # In-VMEM "im2col": (KH*KW*Cin, Lv).  Never materialized in HBM.
    rhs = jnp.concatenate(rows, axis=0)

    # Single MXU contraction, f32 accumulation.
    acc = jnp.dot(w_ref[...], rhs, preferred_element_type=jnp.float32)
    acc = acc + b_ref[...].astype(jnp.float32)               # (Cout, Lv)
    o_ref[0, 0] = acc.astype(o_ref.dtype)


def conv_layer(x, weight, bias, stride, compute_dtype=None, row_tile=None):
    """Forward of ReflectionPad2d(k//2) + Conv2d(Cin, Cout, k, stride).

    x: (N, Cin, H, W); weight: (Cout, Cin, KH, KW) [PyTorch layout]; bias: (Cout,).
    Returns (N, Cout, Ho, Wo) in x.dtype, Ho = (H + 2*(k//2) - k)//stride + 1.
    """
    N, Cin, H, W = x.shape
    Cout, Cin_w, KH, KW = weight.shape
    assert Cin_w == Cin and KH == KW
    s = int(stride)
    out_dtype = x.dtype

    # Cast before ALL the XLA glue so pad/phase/tiling traffic is halved too.
    if compute_dtype is not None:
        x = x.astype(compute_dtype)
        weight = weight.astype(compute_dtype)
    cdt = x.dtype
    esize = jnp.dtype(cdt).itemsize

    p = KH // 2
    Hp, Wp = H + 2 * p, W + 2 * p
    Ho = (Hp - KH) // s + 1
    Wo = (Wp - KW) // s + 1
    DH, DW = (KH - 1) // s, (KW - 1) // s
    Hq, Wq = Ho + DH, Wo + DW
    K = KH * KW * Cin

    # Reflection pad in NCHW (channel-major already matches the kernel layout).
    x_pad = jnp.pad(x, ((0, 0), (0, 0), (p, p), (p, p)), mode="reflect")

    # Sub-pixel phase decomposition; skipped entirely for stride 1 (pure view).
    if s == 1:
        x_flat = x_pad.reshape(N, 1, Cin, Hq * Wq)
    else:
        phases = []
        for a in range(s):
            for b in range(s):
                ph = x_pad[:, :, a::s, b::s][:, :, :Hq, :Wq]
                ph = jnp.pad(ph, ((0, 0), (0, 0),
                                  (0, Hq - ph.shape[2]), (0, Wq - ph.shape[3])))
                phases.append(ph)
        x_flat = jnp.stack(phases, axis=1).reshape(N, s * s, Cin, Hq * Wq)

    # ---- output-row tiling (VMEM-budgeted, v7x-safe) ----
    def _step_bytes(th):
        lt = (th + DH) * Wq
        lv = (th - 1) * Wq + Wo
        return (2 * (s * s * Cin * lt * esize + Cout * lv * 4)
                + Cout * K * esize + Cout * 4)

    if row_tile is None:
        TH = max(1, 4096 // max(Wq, 1))          # ~4K output lanes per tile
        while TH > 1 and _step_bytes(TH) > 24 * 2 ** 20:
            TH //= 2
    else:
        TH = int(row_tile)
    TH = min(TH, Ho)
    n_t = -(-Ho // TH)
    Ho_pad = n_t * TH
    Lt = (TH + DH) * Wq                          # input lanes per tile (w/ halo)
    Lv = (TH - 1) * Wq + Wo                      # output lanes per tile

    if n_t == 1:
        x_tiles = x_flat[:, None]                # (N, 1, s*s, Cin, Hq*Wq); a view
    else:
        need = (Ho_pad + DH) * Wq
        x_flat = jnp.pad(x_flat, ((0, 0), (0, 0), (0, 0), (0, need - Hq * Wq)))
        x_tiles = jnp.stack(
            [x_flat[..., t * TH * Wq: t * TH * Wq + Lt] for t in range(n_t)],
            axis=1)                              # halo rows duplicated at edges only

    # Weights as (Cout, K) with K ordered (kh, kw, ci); bias as f32 column.
    w_mat = jnp.transpose(weight, (0, 2, 3, 1)).reshape(Cout, K)
    b_col = bias.reshape(Cout, 1).astype(jnp.float32)

    kernel = functools.partial(_conv_kernel, KH=KH, KW=KW, s=s, Wq=Wq, Lv=Lv)

    cost = pl.CostEstimate(
        flops=2 * N * n_t * Cout * K * Lv,
        transcendentals=0,
        bytes_accessed=int(N * n_t * s * s * Cin * Lt * esize
                           + Cout * K * esize + Cout * 4
                           + N * n_t * Cout * Lv * jnp.dtype(out_dtype).itemsize))

    out_k = pl.pallas_call(
        kernel,
        out_shape=jax.ShapeDtypeStruct((N, n_t, Cout, Lv), out_dtype),
        grid_spec=pltpu.PrefetchScalarGridSpec(
            num_scalar_prefetch=0,
            grid=(N, n_t),
            in_specs=[
                pl.BlockSpec((1, 1, s * s, Cin, Lt),
                             lambda n, t: (n, t, 0, 0, 0)),
                pl.BlockSpec((Cout, K), lambda n, t: (0, 0)),   # resident
                pl.BlockSpec((Cout, 1), lambda n, t: (0, 0)),   # resident
            ],
            out_specs=pl.BlockSpec((1, 1, Cout, Lv), lambda n, t: (n, t, 0, 0)),
        ),
        compiler_params=pltpu.CompilerParams(
            dimension_semantics=("parallel", "parallel"),
            vmem_limit_bytes=int(min(48 * 2 ** 20,
                                     max(32 * 2 ** 20, 2 * _step_bytes(TH)))),
        ),
        cost_estimate=cost,
    )(x_tiles, w_mat, b_col)

    # Unpack (N, n_t, Cout, Lv) -> (N, Cout, Ho, Wo).  The lane axis carries
    # Wq-wide rows (Wo valid columns each); XLA fuses this into one copy.
    out = jnp.pad(out_k, ((0, 0), (0, 0), (0, 0), (0, TH * Wq - Lv)))
    out = out.reshape(N, n_t, Cout, TH, Wq)[..., :Wo]
    out = jnp.transpose(out, (0, 2, 1, 3, 4)).reshape(N, Cout, Ho_pad, Wo)
    return out[:, :, :Ho, :]                     # already NCHW - no transpose


def ref_conv_layer(x, weight, bias, stride):
    """Pure-JAX reference: reflection pad + VALID conv (NCHW, f32)."""
    p = weight.shape[-1] // 2
    xp = jnp.pad(x, ((0, 0), (0, 0), (p, p), (p, p)), mode="reflect")
    out = jax.lax.conv_general_dilated(
        xp, weight, window_strides=(stride, stride), padding="VALID",
        dimension_numbers=("NCHW", "OIHW", "NCHW"),
        precision=jax.lax.Precision.HIGHEST)
    return out + bias.reshape(1, -1, 1, 1)


if __name__ == "__main__":
    # Module config (synthetic, deterministic init — not a checkpoint load).
    in_channels, out_channels, kernel_size = 4, 8, 3
    N, H, W = 2, 16, 16

    key = jax.random.PRNGKey(0)
    kx, kwt, kb = jax.random.split(key, 3)
    x = jax.random.normal(kx, (N, in_channels, H, W), jnp.float32)
    weight = 0.1 * jax.random.normal(
        kwt, (out_channels, in_channels, kernel_size, kernel_size), jnp.float32)
    bias = 0.1 * jax.random.normal(kb, (out_channels,), jnp.float32)

    conv_jit = jax.jit(conv_layer,
                       static_argnames=("stride", "compute_dtype", "row_tile"))

    # f32 path, single row tile, both strides the module uses in practice.
    for stride in (1, 2):
        out = jax.block_until_ready(conv_jit(x, weight, bias, stride=stride))
        ref = ref_conv_layer(x, weight, bias, stride)
        assert out.shape == ref.shape, (out.shape, ref.shape)
        assert jnp.allclose(out, ref, atol=1e-4, rtol=1e-4), \
            f"mismatch vs reference (stride={stride})"

    # Row-tiled path: grid=(N, n_tiles), including a non-dividing tile count.
    x2 = jax.random.normal(kx, (N, in_channels, 20, 20), jnp.float32)
    for stride, rt in ((1, 8), (2, 4)):
        out = jax.block_until_ready(
            conv_jit(x2, weight, bias, stride=stride, row_tile=rt))
        ref = ref_conv_layer(x2, weight, bias, stride)
        assert out.shape == ref.shape, (out.shape, ref.shape)
        assert jnp.allclose(out, ref, atol=1e-4, rtol=1e-4), \
            f"mismatch vs reference (tiled, stride={stride}, row_tile={rt})"

    # bf16 MXU path (bf16 inputs/weights, f32 accumulation), relaxed tolerance.
    out_bf16 = jax.block_until_ready(
        conv_jit(x, weight, bias, stride=2, compute_dtype=jnp.bfloat16))
    ref2 = ref_conv_layer(x, weight, bias, 2)
    assert jnp.allclose(out_bf16, ref2, atol=5e-2, rtol=5e-2), \
        "mismatch vs reference (bf16 inputs)"

    print("KERNEL_OK")
</pallas_src>

<mosaic_0001>
module attributes {stable_mosaic.version = 11 : i64} {
  func.func @_conv_kernel(%arg0: i32, %arg1: i32, %arg2: memref<1x1x1x4x324xf32, #tpu.memory_space<vmem>>, %arg3: memref<8x36xf32, #tpu.memory_space<vmem>>, %arg4: memref<8x1xf32, #tpu.memory_space<vmem>>, %arg5: memref<1x1x8x286xf32, #tpu.memory_space<vmem>>) attributes {dimension_semantics = [#tpu.dimension_semantics<parallel>, #tpu.dimension_semantics<parallel>], iteration_bounds = array<i64: 2, 1>, scalar_prefetch = 0 : i64, scratch_operands = 0 : i64, tpu.core_type = #tpu.core_type<tc>, window_params = [{transform_indices = @transform_0, window_bounds = array<i64: 1, 1, 1, 4, 324>}, {pipeline_mode = #tpu.pipeline_mode<synchronous>, transform_indices = @transform_1, window_bounds = array<i64: 8, 36>}, {pipeline_mode = #tpu.pipeline_mode<synchronous>, transform_indices = @transform_2, window_bounds = array<i64: 8, 1>}, {transform_indices = @transform_3, window_bounds = array<i64: 1, 1, 8, 286>}]} {
    %c0 = arith.constant 0 : index
    %c0_0 = arith.constant 0 : index
    %c0_1 = arith.constant 0 : index
    %c0_2 = arith.constant 0 : index
    %c0_3 = arith.constant 0 : index
    %0 = vector.load %arg2[%c0, %c0_0, %c0_1, %c0_2, %c0_3] : memref<1x1x1x4x324xf32, #tpu.memory_space<vmem>>, vector<1x1x1x4x324xf32>
    %1 = vector.shape_cast %0 : vector<1x1x1x4x324xf32> to vector<4x324xf32>
    %2 = vector.extract_strided_slice %1 {offsets = [0, 0], sizes = [4, 286], strides = [1, 1]} : vector<4x324xf32> to vector<4x286xf32>
    %3 = vector.extract_strided_slice %1 {offsets = [0, 1], sizes = [4, 286], strides = [1, 1]} : vector<4x324xf32> to vector<4x286xf32>
    %4 = vector.extract_strided_slice %1 {offsets = [0, 2], sizes = [4, 286], strides = [1, 1]} : vector<4x324xf32> to vector<4x286xf32>
    %5 = vector.extract_strided_slice %1 {offsets = [0, 18], sizes = [4, 286], strides = [1, 1]} : vector<4x324xf32> to vector<4x286xf32>
    %6 = vector.extract_strided_slice %1 {offsets = [0, 19], sizes = [4, 286], strides = [1, 1]} : vector<4x324xf32> to vector<4x286xf32>
    %7 = vector.extract_strided_slice %1 {offsets = [0, 20], sizes = [4, 286], strides = [1, 1]} : vector<4x324xf32> to vector<4x286xf32>
    %8 = vector.extract_strided_slice %1 {offsets = [0, 36], sizes = [4, 286], strides = [1, 1]} : vector<4x324xf32> to vector<4x286xf32>
    %9 = vector.extract_strided_slice %1 {offsets = [0, 37], sizes = [4, 286], strides = [1, 1]} : vector<4x324xf32> to vector<4x286xf32>
    %10 = vector.extract_strided_slice %1 {offsets = [0, 38], sizes = [4, 286], strides = [1, 1]} : vector<4x324xf32> to vector<4x286xf32>
    %11 = tpu.concatenate %2, %3, %4, %5, %6, %7, %8, %9, %10 in 0 : vector<4x286xf32>, vector<4x286xf32>, vector<4x286xf32>, vector<4x286xf32>, vector<4x286xf32>, vector<4x286xf32>, vector<4x286xf32>, vector<4x286xf32>, vector<4x286xf32> -> vector<36x286xf32>
    %c0_4 = arith.constant 0 : index
    %c0_5 = arith.constant 0 : index
    %12 = vector.load %arg3[%c0_4, %c0_5] : memref<8x36xf32, #tpu.memory_space<vmem>>, vector<8x36xf32>
    %cst = arith.constant dense<0.000000e+00> : vector<8x286xf32>
    %13 = tpu.matmul %12, %11, %cst {dimension_numbers = #tpu.dot_dimension_numbers<[1], [0], [0], [1], [0, 0, 1, 1], [], []>} : vector<8x36xf32>, vector<36x286xf32>, vector<8x286xf32> -> vector<8x286xf32>
    %c0_6 = arith.constant 0 : index
    %c0_7 = arith.constant 0 : index
    %14 = vector.load %arg4[%c0_6, %c0_7] : memref<8x1xf32, #tpu.memory_space<vmem>>, vector<8x1xf32>
    %15 = vector.broadcast %14 : vector<8x1xf32> to vector<8x286xf32>
    %16 = arith.addf %13, %15 : vector<8x286xf32>
    %c0_8 = arith.constant 0 : index
    %c0_9 = arith.constant 0 : index
    %c0_10 = arith.constant 0 : index
    %c0_11 = arith.constant 0 : index
    %17 = vector.load %arg5[%c0_8, %c0_9, %c0_10, %c0_11] : memref<1x1x8x286xf32, #tpu.memory_space<vmem>>, vector<1x1x8x286xf32>
    %18 = vector.shape_cast %17 : vector<1x1x8x286xf32> to vector<8x286xf32>
    %19 = vector.shape_cast %16 : vector<8x286xf32> to vector<1x1x8x286xf32>
    tpu.vector_store %arg5[%c0_8, %c0_9, %c0_10, %c0_11], %19 {strides = array<i32>} : memref<1x1x8x286xf32, #tpu.memory_space<vmem>>, vector<1x1x8x286xf32>,
    return
  }
  func.func @transform_0(%arg0: i32, %arg1: i32) -> (i32, i32, i32, i32, i32) {
    %c0_i32 = arith.constant 0 : i32
    %c0_i32_0 = arith.constant 0 : i32
    %c0_i32_1 = arith.constant 0 : i32
    %c0_i32_2 = arith.constant 0 : i32
    return %arg0, %arg1, %c0_i32, %c0_i32_0, %c0_i32_1 : i32, i32, i32, i32, i32
  }
  func.func @transform_1(%arg0: i32, %arg1: i32) -> (i32, i32) {
    %c0_i32 = arith.constant 0 : i32
    %c0_i32_0 = arith.constant 0 : i32
    %c0_i32_1 = arith.constant 0 : i32
    return %c0_i32, %c0_i32_0 : i32, i32
  }
  func.func @transform_2(%arg0: i32, %arg1: i32) -> (i32, i32) {
    %c0_i32 = arith.constant 0 : i32
    %c0_i32_0 = arith.constant 0 : i32
    %c0_i32_1 = arith.constant 0 : i32
    return %c0_i32, %c0_i32_0 : i32, i32
  }
  func.func @transform_3(%arg0: i32, %arg1: i32) -> (i32, i32, i32, i32) {
    %c0_i32 = arith.constant 0 : i32
    %c0_i32_0 = arith.constant 0 : i32
    %c0_i32_1 = arith.constant 0 : i32
    return %arg0, %arg1, %c0_i32, %c0_i32_0 : i32, i32, i32, i32
  }
}

</mosaic_0001>

<bundles_post_ra>
// kernel: conv_layer.1
= control target key start
LH: loop header
LB: loop body
LE: loop exit
PB: predicated region body
PF: predicated region fallthrough
CT: control target
= control target key end

     0   :  { %s691_s12 = smov 0   ;;  %s693_s13 = smov 0   ;;  %s814_s0 = inlined_call_operand.vmem [shape: f32[2,1,1,4,324], index: 0, kind: input, shape index: {}]   ;;  %s815_s1 = inlined_call_operand.vmem [shape: f32[8,36], index: 1, kind: input, shape index: {}]   ;;  %s816_s2 = inlined_call_operand.vmem [shape: f32[8,1], index: 2, kind: input, shape index: {}]   ;;  %s817_s3 = inlined_call_operand.vmem [shape: f32[2,1,8,286], index: 3, kind: output, shape index: {}]  }
   0x1   :  { %s695_s14 = smov 0  }
   0x2 LB: > { %s25_s15 = sadd.s32 1, %s656_s13  ;;  %p555_p0 = scmp.ge.s32.totalorder %s660_s14, 1  ;;  %s660_s14 = sphi %s695_s14, %s13_s14   ;;  %s656_s13 = sphi %s693_s13, %s819_s13   ;;  %s652_s12 = sphi %s691_s12, %s818_s12  }
   0x3   : > { %p27_p1 = scmp.ge.s32.totalorder %s25_s15, 2  ;;  %p157_p2 = scmp.lt.s32.totalorder %s660_s14, 3 }
   0x5   : > { %s821_s15 = smov (%p27_p1, %s25_s15), 0  ;;  %p158_p3 = pnand %p555_p0, %p157_p2 }
   0x6   : > { %p189_p4 = scmp.lt.s32.totalorder (!%p158_p3), %s652_s12, 1  ;;  %s662_s20 = smov (!%p158_p3), 127  }
   0x7   : > { %161 = sbr.rel (%p158_p3) target bundleno = 364 (0x16c), region = 32  ;;  %s663_s21 = smov (!%p158_p3), 110  }
   0x8   : > { %s664_s22 = smov (!%p158_p3), 126   ;;  %s665_s23 = smov (!%p158_p3), 109  }
   0x9   : > { %s666_s24 = smov (!%p158_p3), 108   ;;  %s667_s25 = smov (!%p158_p3), 92  }
   0xa   : > { %s668_s26 = smov (!%p158_p3), 91   ;;  %s669_s27 = smov (!%p158_p3), 90  }
   0xc   : > { %s823_s12 = smov (!%p189_p4, %s652_s12), 1  ;;  %v379_v44 = vld [vmem:[%s816_s2] sm:$0xff]  ;;  %v670_v46 = vmov 0   ;;  %vm325_vm0 = vcmask 752640   ;;  %vm344_vm1 = vcmask 744448   ;;  %vm362_vm2 = vcmask 736256  }
   0xd   : > { %s566_s16 = smul.u32 12, %s823_s12  ;;  %636 = vset.pattern.permute.xlu2 %v670_v46  ;;  %637 = vset.pattern.permute.xlu0 %v670_v46  ;;  %vm365_vm3 = vcmask 1043456   ;;  %vm288_vm4 = vcmask 891904   ;;  %vm307_vm5 = vcmask 883712   ;;  %v378_v63 = vld [vmem:[%s815_s1] sm:$0xff]  ;;  %vm385_vm6 = vcmask 293888  }
   0xe   : > { %vm251_vm7 = vcmask 1031168   ;;  %vm270_vm8 = vcmask 900096   ;;  %vm233_vm9 = vcmask 1039360   ;;  %s567_s5 = smul.u32 24, %s823_s12  ;;  %vm457_vm10 = vcmask 244736  }
   0xf   : > { %s197_s19 = scalar_lea.vmem %s814_s0, %s566_s16 }
  0x10   : > { %v207_v0 = vld [vmem:[%s197_s19] sm:$0xff]  ;;  %v208_v1 = vld [vmem:[%s197_s19 + $0x8] sm:$0xf]  ;;  %s206_s8 = scalar_lea.vmem %s817_s3, %s567_s5 }
  0x11   : > { %211 = vst [vmem:[#allocation1] ss:$2 sm:$0xff] %v207_v0 }
  0x12   : > { %213 = vst [vmem:[#allocation1 + $0x10] ss:$2 sm:$0xff] %v208_v1 }
  0x18   : > { %v715_v2 = vld.sshfl [vmem:[#allocation1] sm:$0xff pattern:$0x75316420]  ;;  %v717_v3 = vld.sshfl [vmem:[#allocation1 + $0x8] sm:$0xff pattern:$0x75316420] }
  0x19   : > { %v719_v4 = vld.sshfl [vmem:[#allocation1 + $0x10] sm:$0xff pattern:$0x75316420]  ;;  %221 = vst [vmem:[#allocation1 + $0x1] ss:$2 sm:$0xff] %v207_v0 }
  0x1a   : > { %223 = vst [vmem:[#allocation1 + $0x11] ss:$2 sm:$0xff] %v208_v1 }
  0x20   : > { %v224_v5 = vld.sshfl [vmem:[#allocation1] sm:$0xff pattern:$0x75316420]  ;;  %v721_v6 = vld.sshfl [vmem:[#allocation1 + $0x8] sm:$0xff pattern:$0x75316420] }
  0x21   : > { %v226_v7 = vld.sshfl [vmem:[#allocation1 + $0x10] sm:$0xff pattern:$0x75316420]  ;;  %239 = vst [vmem:[#allocation1] ss:$2 sm:$0xff] %v207_v0 }
  0x22   : > { %241 = vst [vmem:[#allocation1 + $0x10] ss:$2 sm:$0xff] %v208_v1  ;;  %v601_v11 = vpack.i.bf16 %v224_v5, %v226_v7 }
  0x24   : > { %602 = vrot.lane.b32.xlu2 %v601_v11, %s662_s20 }
  0x28   : > { %v242_v8 = vld.sshfl [vmem:[#allocation1] sm:$0xff pattern:$0x75316420]  ;;  %v243_v9 = vld.sshfl [vmem:[#allocation1 + $0x8] sm:$0xff pattern:$0x75316420] }
  0x29   : > { %v244_v10 = vld.sshfl [vmem:[#allocation1 + $0x10] sm:$0xff pattern:$0x75316420]  ;;  %258 = vst [vmem:[#allocation1 + $0x1] ss:$2 sm:$0xff] %v207_v0 }
  0x2a   : > { %260 = vst [vmem:[#allocation1 + $0x11] ss:$2 sm:$0xff] %v208_v1  ;;  %v606_v16 = vpack.i.bf16 %v242_v8, %v244_v10 }
  0x2c   : > { %607 = vrot.lane.b32.xlu2 %v606_v16, %s664_s22 }
  0x30   : > { %v261_v12 = vld.sshfl [vmem:[#allocation1] sm:$0xff pattern:$0x75316420]  ;;  %v262_v13 = vld.sshfl [vmem:[#allocation1 + $0x8] sm:$0xff pattern:$0x75316420] }
  0x31   : > { %v263_v14 = vld.sshfl [vmem:[#allocation1 + $0x10] sm:$0xff pattern:$0x75316420]  ;;  %276 = vst [vmem:[#allocation1] ss:$2 sm:$0xff] %v207_v0 }
  0x32   : > { %278 = vst [vmem:[#allocation1 + $0x10] ss:$2 sm:$0xff] %v208_v1  ;;  %v611_v15 = vpack.i.bf16 %v261_v12, %v263_v14 }
  0x34   : > { %612 = vrot.lane.b32.xlu0 %v611_v15, %s663_s21 }
  0x38   : > { %v280_v17 = vld.sshfl [vmem:[#allocation1 + $0x8] sm:$0xff pattern:$0x75316420]  ;;  %v279_v18 = vld.sshfl [vmem:[#allocation1] sm:$0xff pattern:$0x75316420] }
  0x39   : > { %v281_v19 = vld.sshfl [vmem:[#allocation1 + $0x10] sm:$0xff pattern:$0x75316420]  ;;  %295 = vst [vmem:[#allocation1 + $0x1] ss:$2 sm:$0xff] %v207_v0 }
  0x3a   : > { %297 = vst [vmem:[#allocation1 + $0x11] ss:$2 sm:$0xff] %v208_v1  ;;  %v616_v20 = vpack.i.bf16 %v279_v18, %v281_v19 }
  0x3c   : > { %617 = vrot.lane.b32.xlu1 %v616_v20, %s665_s23 }
  0x40   : > { %v298_v21 = vld.sshfl [vmem:[#allocation1] sm:$0xff pattern:$0x75316420]  ;;  %v299_v22 = vld.sshfl [vmem:[#allocation1 + $0x8] sm:$0xff pattern:$0x75316420] }
  0x41   : > { %v300_v23 = vld.sshfl [vmem:[#allocation1 + $0x10] sm:$0xff pattern:$0x75316420]  ;;  %313 = vst [vmem:[#allocation1] ss:$2 sm:$0xff] %v207_v0 }
  0x42   : > { %315 = vst [vmem:[#allocation1 + $0x10] ss:$2 sm:$0xff] %v208_v1  ;;  %v621_v24 = vpack.i.bf16 %v298_v21, %v300_v23 }
  0x44   : > { %622 = vrot.lane.b32.xlu2 %v621_v24, %s666_s24 }
  0x48   : > { %v316_v25 = vld.sshfl [vmem:[#allocation1] sm:$0xff pattern:$0x75316420]  ;;  %v317_v26 = vld.sshfl [vmem:[#allocation1 + $0x8] sm:$0xff pattern:$0x75316420] }
  0x49   : > { %v318_v27 = vld.sshfl [vmem:[#allocation1 + $0x10] sm:$0xff pattern:$0x75316420]  ;;  %332 = vst [vmem:[#allocation1 + $0x1] ss:$2 sm:$0xff] %v207_v0 }
  0x4a   : > { %334 = vst [vmem:[#allocation1 + $0x11] ss:$2 sm:$0xff] %v208_v1  ;;  %v626_v28 = vpack.i.bf16 %v316_v25, %v318_v27 }
  0x4c   : > { %627 = vrot.lane.b32.xlu0 %v626_v28, %s667_s25 }
  0x50   : > { %v335_v29 = vld.sshfl [vmem:[#allocation1] sm:$0xff pattern:$0x75316420]  ;;  %v336_v30 = vld.sshfl [vmem:[#allocation1 + $0x8] sm:$0xff pattern:$0x75316420] }
  0x51   : > { %v337_v31 = vld.sshfl [vmem:[#allocation1 + $0x10] sm:$0xff pattern:$0x75316420]  ;;  %350 = vst [vmem:[#allocation1] ss:$2 sm:$0xff] %v207_v0 }
  0x52   : > { %352 = vst [vmem:[#allocation1 + $0x10] ss:$2 sm:$0xff] %v208_v1  ;;  %v631_v32 = vpack.i.bf16 %v335_v29, %v337_v31 }
  0x54   : > { %321 = vrot.lane.b32.xlu0 %v317_v26, %s667_s25  ;;  %632 = vrot.lane.b32.xlu1 %v631_v32, %s668_s26 }
  0x58   : > { %v354_v33 = vld.sshfl [vmem:[#allocation1 + $0x8] sm:$0xff pattern:$0x75316420]  ;;  %v353_v35 = vld.sshfl [vmem:[#allocation1] sm:$0xff pattern:$0x75316420] }
  0x59   : > { %v355_v34 = vld.sshfl [vmem:[#allocation1 + $0x10] sm:$0xff pattern:$0x75316420]  ;;  %358 = vrot.lane.b32.xlu2 %v354_v33, %s669_s27 }
  0x5c   : > { %360 = vrot.lane.b32.xlu0 %v355_v34, %s669_s27  ;;  %340 = vrot.lane.b32.xlu1 %v336_v30, %s668_s26 }
  0x61   : > { %247 = vrot.lane.b32.xlu2 %v243_v9, %s664_s22 }
  0x64   : > { %284 = vrot.lane.b32.xlu0 %v280_v17, %s665_s23  ;;  %303 = vrot.lane.b32.xlu1 %v299_v22, %s666_s24 }
  0x69   : > { %382 = vperm.xlu2 %636, %v379_v44  }
  0x6c   : > { %266 = vrot.lane.b32.xlu0 %v262_v13, %s663_s21  ;;  %356 = vrot.lane.b32.xlu1 %v353_v35, %s669_s27 }
  0x74   : > { %229 = vrot.lane.b32.xlu1 %v721_v6, %s662_s20 }
  0x7e   : > { %v732_v36 = vpop.permute.xlu2 %602 }
  0x7f   : > { %v604_v60 = vunpack.i.l.bf16 %v732_v36  ;;  %v605_v29 = vunpack.i.h.bf16 %v732_v36 }
  0x81   : > { %v368_v5 = vsel %vm365_vm3, %v719_v4, %v604_v60 }
  0x86   : > { %v736_v38 = vpop.permute.xlu2 %607 }
  0x87   : > { %v609_v56 = vunpack.i.l.bf16 %v736_v38  ;;  %v610_v4 = vunpack.i.h.bf16 %v736_v38 }
  0x9e   : > { %v742_v41 = vpop.permute.xlu2 %622 }
  0x9f   : > { %v624_v50 = vunpack.i.l.bf16 %v742_v41  ;;  %v625_v9 = vunpack.i.h.bf16 %v742_v41 }
  0xa6   : > { %v734_v37 = vpop.permute.xlu0 %612 }
  0xa7   : > { %v614_v57 = vunpack.i.l.bf16 %v734_v37  ;;  %v615_v17 = vunpack.i.h.bf16 %v734_v37 }
  0xa9   : > { %v371_v62 = vsel %vm365_vm3, %v609_v56, %v614_v57 }
  0xae   : > { %v738_v39 = vpop.permute.xlu1 %617 }
  0xaf   : > { %v619_v49 = vunpack.i.l.bf16 %v738_v39  ;;  %v620_v13 = vunpack.i.h.bf16 %v738_v39 }
  0xb1   : > { %v374_v61 = vsel %vm365_vm3, %v619_v49, %v624_v50 }
  0xb3   : > { %v359_v48 = vpop.permute.xlu2 %358 }
  0xbb   : > { %v248_v12 = vpop.permute.xlu2 %247 }
  0xbc   : > { %v253_v18 = vsel %vm251_vm7, %v248_v12, %v609_v56  ;;  %v252_v28 = vsel %vm251_vm7, %v610_v4, %v248_v12 }
  0xbe   : > { %v740_v40 = vpop.permute.xlu0 %627 }
  0xbf   : > { %v629_v45 = vunpack.i.l.bf16 %v740_v40  ;;  %v630_v10 = vunpack.i.h.bf16 %v740_v40 }
  0xc3   : > { %v383_v36 = vpop.permute.xlu2 %382 }
  0xc6   : > { %v744_v42 = vpop.permute.xlu0 %321  ;;  %v633_v43 = vpop.permute.xlu1 %632 }
  0xc7   : > { %v634_v47 = vunpack.i.l.bf16 %v633_v43  ;;  %v327_v53 = vsel %vm325_vm0, %v744_v42, %v629_v45  ;;  %v635_v11 = vunpack.i.h.bf16 %v633_v43  ;;  %v326_v21 = vsel %vm325_vm0, %v630_v10, %v744_v42 }
  0xc9   : > { %v377_v58 = vsel %vm365_vm3, %v629_v45, %v634_v47 }
  0xce   : > { %v361_v51 = vpop.permute.xlu0 %360  ;;  %v341_v52 = vpop.permute.xlu1 %340 }
  0xcf   : > { %v346_v54 = vsel %vm344_vm1, %v341_v52, %v634_v47  ;;  %562 = vmatpush.msk.msra.mxu2 %vm365_vm3, %v361_v51  ;;  %v364_v55 = vsel %vm362_vm2, %v359_v48, %v361_v51  ;;  %v345_v14 = vsel %vm344_vm1, %v635_v11, %v341_v52 }
  0xd0   : > { %560 = vmatpush.msk.msra.mxu1 %vm365_vm3, %v364_v55  ;;  %v376_v59 = vsel %vm365_vm3, %v327_v53, %v346_v54  ;;  %v375_v25 = vsel %vm365_vm3, %v326_v21, %v345_v14 }
  0xd1   : > { %447 = vmatpush.msra.mxu2 %v377_v58 }
  0xd2   : > { %427 = vmatpush.msra.mxu1 %v376_v59 }
  0xd3   : > { %448 = vmatpush.msra.mxu2 %v374_v61 }
  0xd5   : > { %449 = vmatpush.msra.mxu2 %v371_v62 }
  0xd6   : > { %v285_v0 = vpop.permute.xlu0 %284  ;;  %v304_v1 = vpop.permute.xlu1 %303 }
  0xd7   : > { %v290_v6 = vsel %vm288_vm4, %v285_v0, %v619_v49  ;;  %v309_v7 = vsel %vm307_vm5, %v304_v1, %v624_v50  ;;  %450 = vmatpush.msra.mxu2 %v368_v5  ;;  %v289_v22 = vsel %vm288_vm4, %v620_v13, %v285_v0  ;;  %v308_v23 = vsel %vm307_vm5, %v625_v9, %v304_v1 }
  0xd8   : > { %v373_v8 = vsel %vm365_vm3, %v290_v6, %v309_v7  ;;  %563 = vmatmul.msk.f32.vlgmr.msra.gmra.mxu2 %vm385_vm6, %v378_v63  ;;  %v372_v27 = vsel %vm365_vm3, %v289_v22, %v308_v23 }
  0xd9   : > { %428 = vmatpush.msra.mxu1 %v373_v8 }
  0xde   : > { %v267_v15 = vpop.permute.xlu0 %266  ;;  %v357_v16 = vpop.permute.xlu1 %356 }
  0xdf   : > { %v272_v19 = vsel %vm270_vm8, %v267_v15, %v614_v57  ;;  %v363_v20 = vsel %vm362_vm2, %v357_v16, %v359_v48  ;;  %v271_v26 = vsel %vm270_vm8, %v615_v17, %v267_v15 }
  0xe0   : > { %558 = vmatpush.msk.msra.mxu0 %vm365_vm3, %v363_v20  ;;  %v370_v24 = vsel %vm365_vm3, %v253_v18, %v272_v19  ;;  %v369_v30 = vsel %vm365_vm3, %v252_v28, %v271_v26 }
  0xe1   : > { %429 = vmatpush.msra.mxu1 %v370_v24 }
  0xe2   : > { %407 = vmatpush.msra.mxu0 %v375_v25 }
  0xe4   : > { %408 = vmatpush.msra.mxu0 %v372_v27 }
  0xe6   : > { %409 = vmatpush.msra.mxu0 %v369_v30  ;;  %v230_v31 = vpop.permute.xlu1 %229 }
  0xe7   : > { %v234_v32 = vsel %vm233_vm9, %v605_v29, %v230_v31  ;;  %v235_v33 = vsel %vm233_vm9, %v230_v31, %v604_v60 }
  0xe8   : > { %v366_v34 = vsel %vm365_vm3, %v715_v2, %v234_v32  ;;  %v367_v35 = vsel %vm365_vm3, %v717_v3, %v235_v33 }
  0xe9   : > { %410 = vmatpush.msra.mxu0 %v366_v34  ;;  %430 = vmatpush.msra.mxu1 %v367_v35 }
  0xea   : > { %559 = vmatmul.msk.f32.vlgmr.msra.gmra.mxu0 %vm385_vm6, %v378_v63  ;;  %561 = vmatmul.msk.f32.vlgmr.msra.gmra.mxu1 %vm385_vm6, %v378_v63 }
 0x15b   : > { %v452_v37 = vpop.f32.mrf.mxu2 }
 0x15c   : > { %v453_v38 = vadd.f32 %v452_v37, %v383_v36 }
 0x15e   : > { %458 = vst.msk [vmem:[%s206_s8 + $0x10] sm:$0xff] %vm457_vm10, %v453_v38 }
 0x167   : > { %v412_v2 = vpop.f32.mrf.mxu0  ;;  %v432_v39 = vpop.f32.mrf.mxu1 }
 0x168   : > { %v413_v40 = vadd.f32 %v412_v2, %v383_v36  ;;  %v433_v3 = vadd.f32 %v432_v39, %v383_v36 }
 0x16a   : > { %455 = vst [vmem:[%s206_s8] sm:$0xff] %v413_v40 }
 0x16b   : > { %456 = vst [vmem:[%s206_s8 + $0x8] sm:$0xff] %v433_v3 }
 0x16c PF: > { %s13_s14 = sadd.s32 1, %s660_s14   ;;  %s818_s12 = smov %s656_s13 }
 0x16d   : > { %p10_p5 = scmp.ge.s32.totalorder %s13_s14, 4   ;;  %s819_s13 = smov %s821_s15 }
 0x16f   :  { %12 = sbr.rel (!%p10_p5) target bundleno = 2 (0x2), region = 75 }

</bundles_post_ra>
